<compile_context>
chip_gen: v6e
topology: v6e:2x2x1
jax: 0.10.0
libtpu: 0.0.40
codegen_flags: <defaults>
</compile_context>

<pallas_src>
import math
from functools import partial

import jax
import jax.numpy as jnp
from jax.experimental import pallas as pl
from jax.experimental.pallas import tpu as pltpu

_LANES = 128
_ROWS_TARGET = 1024        # rows (block_n * V) we aim to process per grid step
_VPU_ADJ_MAX_V = 32        # V at/below this -> adjacency contraction on the VPU


def _round_up(x, m):
    return (x + m - 1) // m * m


def _min_sublanes(*dtypes):
    """Sublane alignment for the row (second-minor) dim: 8 for 32-bit types,
    16 for bf16, 32 for 8-bit (packed rows travel in pairs/quads)."""
    return max([8] + [32 // jnp.dtype(d).itemsize for d in dtypes])


def _vmem_capacity_bytes():
    """Physical VMEM per TensorCore (generation aware), with a safe fallback."""
    try:
        info = pltpu.get_tpu_info()
        for name in ("vmem_capacity_bytes", "vmem_size_bytes", "vmem_bytes"):
            val = getattr(info, name, None)
            if val:
                return int(val)
    except Exception:
        pass
    return 64 * 1024 * 1024            # conservative: v7x physical VMEM


def _apply_adjacency(a, t2, *, block_n, V, shared_a, vpu, compute_dtype):
    """Applies the adjacency to a (block_n*V, C) tile, returns (block_n*V, C) f32.

    a: (block_n, V, V), or (V, V) when the adjacency is shared across the batch.
    """
    rows, C = t2.shape
    t3 = t2.reshape(block_n, V, C)

    if vpu:
        # Small V: a batched matmul with M=K=V fills only a few percent of the
        # MXU; do the contraction as an unrolled broadcast-MAC on the VPU (its
        # slots are free next to the big GEMM).  No broadcast_to of the shared
        # adjacency is ever materialised.
        acc = jnp.zeros((block_n, V, C), jnp.float32)
        for w_idx in range(V):
            row = t3[:, w_idx:w_idx + 1, :]                    # (block_n, 1, C)
            if shared_a:
                coef = a[:, w_idx:w_idx + 1][None, :, :]       # (1, V, 1)
            else:
                coef = a[:, :, w_idx:w_idx + 1]                # (block_n, V, 1)
            acc = acc + coef.astype(jnp.float32) * row
        return acc.reshape(rows, C)

    lhs = a.astype(compute_dtype) if compute_dtype is not None else a
    rhs = t3.astype(compute_dtype) if compute_dtype is not None else t3
    if shared_a:
        # One 2-D MXU matmul per sample; the shared A stays a single copy.
        parts = [jnp.dot(lhs, rhs[b], preferred_element_type=jnp.float32)
                 for b in range(block_n)]
        return parts[0] if block_n == 1 else jnp.concatenate(parts, axis=0)
    out3 = jnp.einsum('bvw,bwc->bvc', lhs, rhs,
                      preferred_element_type=jnp.float32)
    return out3.reshape(rows, C)


def _gcn_kernel(a_ref, x_ref, w_ref, b_ref, o_ref, acc_ref, *,
                block_n, V, shared_a, vpu_adj, xw_first, compute_dtype):
    """One (batch-block, K-block) grid step.

    a_ref: (block_n, V, V) or (V, V)      x_ref: (block_n*V, tf)
    w_ref: (tf, O_pad)                    b_ref: (1, O_pad) f32
    o_ref: (block_n*V, O_pad)             acc_ref: (block_n*V, O_pad) f32 scratch
    """
    if xw_first:
        k = pl.program_id(1)

        @pl.when(k == 0)
        def _init():
            acc_ref[...] = jnp.zeros_like(acc_ref)

        # One lane-dense (rows, tf) x (tf, O_pad) GEMM per step, accumulated
        # over the (optional) K grid axis in f32.
        acc_ref[...] += jnp.dot(x_ref[...], w_ref[...],
                                preferred_element_type=jnp.float32)

        @pl.when(k == pl.num_programs(1) - 1)
        def _finalize():
            out2 = _apply_adjacency(a_ref[...], acc_ref[...],
                                    block_n=block_n, V=V, shared_a=shared_a,
                                    vpu=vpu_adj, compute_dtype=compute_dtype)
            o_ref[...] = (out2 + b_ref[...]).astype(o_ref.dtype)
    else:
        # (A @ X) @ W ordering: used only when the weight is fully resident
        # (single K step) and F < O (fewer FLOPs in the adjacency step).
        ax2 = _apply_adjacency(a_ref[...], x_ref[...],
                               block_n=block_n, V=V, shared_a=shared_a,
                               vpu=vpu_adj, compute_dtype=compute_dtype)
        if compute_dtype is not None:
            ax2 = ax2.astype(compute_dtype)
        out2 = jnp.dot(ax2, w_ref[...], preferred_element_type=jnp.float32)
        o_ref[...] = (out2 + b_ref[...]).astype(o_ref.dtype)


def gcn_forward(X, A, W, bias, *, compute_dtype=None, block_n=None, k_tile=None,
                return_padded_features=False):
    """GCN forward: matmul(matmul(A, X), W) + bias.

    X: [N, V, F]; A: [N, V, V] or [V, V]; W: [F, O]; bias: [O] -> [N, V, O].
    """
    N, V, F = X.shape
    O = W.shape[1]
    shared_a = (A.ndim == 2)
    out_dtype = X.dtype

    # ---- generation-aware VMEM budget --------------------------------------
    vmem_cap = _vmem_capacity_bytes()              # 64 MiB v7x / 128 MiB v5e,v6e
    vmem_limit = int(vmem_cap * 0.75)              # headroom for compiler scratch
    budget = int(vmem_limit * 0.55)                # per-step tile budget

    if compute_dtype is not None:                  # bf16 HBM traffic + MXU feed
        X = X.astype(compute_dtype)
        W = W.astype(compute_dtype)
    x_bytes = X.dtype.itemsize
    w_bytes = W.dtype.itemsize
    a_bytes = A.dtype.itemsize
    o_bytes = jnp.dtype(out_dtype).itemsize

    # ---- lane-dense output padding ------------------------------------------
    O_pad = _round_up(O, _LANES)

    # ---- K-tiling of the F (reduction) axis so W never blows VMEM ----------
    if k_tile is not None:
        assert k_tile == F or k_tile % _LANES == 0
        tf = k_tile
    elif F * O_pad * w_bytes <= budget // 3:
        tf = F                                     # weight fully resident
    else:
        tf = max(_LANES,
                 (budget // 3) // (2 * O_pad * w_bytes) // _LANES * _LANES)
        tf = min(tf, _round_up(F, _LANES))
    F_pad = _round_up(F, tf)
    k_steps = F_pad // tf

    # ---- adjacency contraction placement & matmul ordering -----------------
    vpu_adj = V <= _VPU_ADJ_MAX_V
    xw_first = not (k_steps == 1 and F < O)

    # ---- rows per grid step --------------------------------------------------
    sub = _min_sublanes(X.dtype, out_dtype)
    f_align = sub // math.gcd(V, sub)              # block_n granularity

    def step_vmem_bytes(bn):
        rows_ = bn * V
        tmp_cols = O_pad if xw_first else max(O_pad, F)
        b = 2 * rows_ * tf * x_bytes                               # X (dbl-buffered)
        b += (1 if k_steps == 1 else 2) * tf * O_pad * w_bytes     # weight
        b += O_pad * 4                                             # bias
        b += (V * V * a_bytes) if shared_a else 2 * bn * V * V * a_bytes
        b += 2 * rows_ * O_pad * o_bytes                           # output block
        b += rows_ * O_pad * 4                                     # f32 accumulator
        b += 3 * rows_ * tmp_cols * 4                              # kernel temporaries
        return b

    if block_n is None:
        cap_rows = max(1, _ROWS_TARGET // V)
        cap_split = max(1, -(-N // 2))     # keep >= 2 batch steps for megacore
        bn = max(1, min(N, cap_rows, cap_split))
        bn = max(f_align, bn // f_align * f_align)
        while bn > f_align and step_vmem_bytes(bn) > budget:
            bn -= f_align
        block_n = bn
    block_rows = block_n * V

    n_steps = -(-N // block_n)
    N_pad = n_steps * block_n
    rows = N * V
    rows_pad = N_pad * V

    # ---- pad / flatten operands outside the kernel --------------------------
    # The kernel only sees lane/sublane-aligned 2-D blocks, so every load and
    # store is an unmasked, lane-dense access.
    X2 = X.reshape(rows, F)
    if rows_pad != rows or F_pad != F:
        X2 = jnp.pad(X2, ((0, rows_pad - rows), (0, F_pad - F)))
    W_p = W if (F_pad == F and O_pad == O) else jnp.pad(
        W, ((0, F_pad - F), (0, O_pad - O)))
    b2 = bias if O_pad == O else jnp.pad(bias, (0, O_pad - O))
    b2 = b2.reshape(1, O_pad).astype(jnp.float32)
    A_p = A
    if not shared_a and N_pad != N:
        A_p = jnp.pad(A, ((0, N_pad - N), (0, 0), (0, 0)))

    kernel = partial(_gcn_kernel, block_n=block_n, V=V, shared_a=shared_a,
                     vpu_adj=vpu_adj, xw_first=xw_first,
                     compute_dtype=compute_dtype)

    flops = 2 * N * V * F * O + 2 * N * V * V * (O if xw_first else F)
    bytes_accessed = (A.size * a_bytes + rows * F * x_bytes
                      + F * O * w_bytes + O * 4 + rows * O * o_bytes)
    cost = pl.CostEstimate(flops=int(flops), transcendentals=0,
                           bytes_accessed=int(bytes_accessed))

    def build_and_call(single_buffer_constants):
        def const_spec(shape):
            # Blocks revisited with the same index every step: single-buffer
            # them so they don't burn a second VMEM copy.
            if single_buffer_constants:
                return pl.BlockSpec(shape, lambda n, k: (0, 0),
                                    pipeline_mode=pl.Buffered(1))
            return pl.BlockSpec(shape, lambda n, k: (0, 0))

        if shared_a:
            a_spec = const_spec((V, V))
        else:
            a_spec = pl.BlockSpec((block_n, V, V), lambda n, k: (n, 0, 0))
        x_spec = pl.BlockSpec((block_rows, tf), lambda n, k: (n, k))
        if k_steps == 1:
            w_spec = const_spec((tf, O_pad))
        else:
            w_spec = pl.BlockSpec((tf, O_pad), lambda n, k: (k, 0))
        b_spec = const_spec((1, O_pad))
        out_spec = pl.BlockSpec((block_rows, O_pad), lambda n, k: (n, 0))

        return pl.pallas_call(
            kernel,
            out_shape=jax.ShapeDtypeStruct((rows_pad, O_pad), out_dtype),
            grid_spec=pltpu.PrefetchScalarGridSpec(
                num_scalar_prefetch=0,
                grid=(n_steps, k_steps),
                in_specs=[a_spec, x_spec, w_spec, b_spec],
                out_specs=out_spec,
                scratch_shapes=[pltpu.VMEM((block_rows, O_pad), jnp.float32)],
            ),
            compiler_params=pltpu.CompilerParams(
                dimension_semantics=("parallel", "arbitrary"),
                vmem_limit_bytes=vmem_limit,
            ),
            cost_estimate=cost,
        )(A_p, X2, W_p, b2)

    try:
        out2 = build_and_call(True)
    except Exception:
        # Fallback if this JAX version rejects single-buffered (Buffered(1))
        # constant operands: use the default double-buffered pipeline.
        out2 = build_and_call(False)

    out = out2.reshape(N_pad, V, O_pad)
    if N_pad != N:
        out = out[:N]
    if not return_padded_features and O_pad != O:
        out = out[..., :O]
    return out


def vector_to_matrix(A_vec, num_node):
    """Plain-JAX glue for GCN(input_vector=True): scatter the upper-triangular
    edge vector into a symmetric matrix and add self-loops (no Pallas win at
    these sizes)."""
    i, j = jnp.triu_indices(num_node, k=1)   # same row-major pair order as PyTorch

    def one(v):
        m = jnp.zeros((num_node, num_node), v.dtype)
        m = m.at[i, j].set(v).at[j, i].set(v)
        return m + jnp.eye(num_node, dtype=v.dtype)

    if A_vec.ndim == 2:
        return jax.vmap(one)(A_vec)
    return one(A_vec)


def init_params(key, in_features, out_features):
    """Matches the PyTorch module init: orthogonal when in==out, else uniform;
    bias ~ U(-0, 0) == zeros."""
    if in_features == out_features:
        w = jax.nn.initializers.orthogonal()(key, (in_features, out_features),
                                             jnp.float32)
    else:
        bound = math.sqrt(1.0 / in_features) * math.sqrt(3.0)
        w = jax.random.uniform(key, (in_features, out_features), jnp.float32,
                               minval=-bound, maxval=bound)
    b = jnp.zeros((out_features,), jnp.float32)
    return w, b


if __name__ == "__main__":
    key = jax.random.PRNGKey(0)

    def reference(A, X, W, b):
        hp = jax.lax.Precision.HIGHEST
        return jnp.matmul(jnp.matmul(A, X, precision=hp), W, precision=hp) + b

    def make_case(k, N, V, F, O, shared):
        k_a, k_x, k_w, k_b = jax.random.split(k, 4)
        A = jax.random.uniform(k_a, ((V, V) if shared else (N, V, V)), jnp.float32)
        A = 0.5 * (A + jnp.swapaxes(A, -1, -2)) + jnp.eye(V, dtype=jnp.float32)
        X = jax.random.normal(k_x, (N, V, F), jnp.float32)
        W, _ = init_params(k_w, F, O)
        b = 0.1 * jax.random.normal(k_b, (O,), jnp.float32)
        return A, X, W, b

    def check(name, out, ref, tol):
        assert out.shape == ref.shape, (name, out.shape, ref.shape)
        ok = jnp.allclose(out, ref, atol=tol, rtol=tol)
        assert bool(ok), (name, float(jnp.max(jnp.abs(out - ref))))

    keys = jax.random.split(key, 8)

    # 1) typical module shapes: small V -> VPU adjacency path, batched A
    A, X, W, b = make_case(keys[0], N=2, V=8, F=32, O=16, shared=False)
    out = jax.block_until_ready(gcn_forward(X, A, W, b))
    check("small_batched", out, reference(A, X, W, b), 1e-3)

    # 2) shared 2-D adjacency (single-buffered constant block)
    A2 = A[0]
    out = jax.block_until_ready(gcn_forward(X, A2, W, b))
    check("small_shared", out, reference(A2, X, W, b), 1e-3)

    # 3) vector2matrix glue (input_vector=True path of the module)
    n_edges = 8 * 7 // 2
    A_vec = jax.random.uniform(keys[5], (2, n_edges), jnp.float32)
    A_m = vector_to_matrix(A_vec, 8)
    out = jax.block_until_ready(gcn_forward(X, A_m, W, b))
    check("vector_adj", out, reference(A_m, X, W, b), 1e-3)

    # 4) K-tiled weight: 2 reduction steps over F with the f32 accumulator
    A, X, W, b = make_case(keys[1], N=4, V=8, F=256, O=128, shared=False)
    out = jax.block_until_ready(gcn_forward(X, A, W, b, k_tile=128))
    check("k_tiled", out, reference(A, X, W, b), 1e-3)

    # 5) MXU adjacency path, A@(X@W) ordering (O <= F), batched A
    A, X, W, b = make_case(keys[2], N=2, V=128, F=256, O=128, shared=False)
    out = jax.block_until_ready(gcn_forward(X, A, W, b))
    check("mxu_xw_first", out, reference(A, X, W, b), 1e-2)

    # 6) MXU adjacency path, (A@X)@W ordering (F < O), shared adjacency
    A, X, W, b = make_case(keys[3], N=4, V=128, F=64, O=256, shared=True)
    out = jax.block_until_ready(gcn_forward(X, A, W, b))
    check("mxu_ax_first_shared", out, reference(A, X, W, b), 1e-2)

    # 7) bf16 MXU inputs (wrapper casts X/W; accumulation & bias stay f32)
    A, X, W, b = make_case(keys[4], N=2, V=8, F=32, O=16, shared=False)
    out = jax.block_until_ready(
        gcn_forward(X, A, W, b, compute_dtype=jnp.bfloat16))
    check("bf16", out, reference(A, X, W, b), 5e-2)

    print("KERNEL_OK")
</pallas_src>

<mosaic_0001>
module attributes {stable_mosaic.version = 11 : i64} {
  func.func @_gcn_kernel(%arg0: i32, %arg1: i32, %arg2: memref<1x8x8xf32, #tpu.memory_space<vmem>>, %arg3: memref<8x32xf32, #tpu.memory_space<vmem>>, %arg4: memref<32x128xf32, #tpu.memory_space<vmem>>, %arg5: memref<1x128xf32, #tpu.memory_space<vmem>>, %arg6: memref<8x128xf32, #tpu.memory_space<vmem>>, %arg7: memref<8x128xf32, #tpu.memory_space<vmem>>) attributes {dimension_semantics = [#tpu.dimension_semantics<parallel>, #tpu.dimension_semantics<arbitrary>], iteration_bounds = array<i64: 2, 1>, scalar_prefetch = 0 : i64, scratch_operands = 1 : i64, tpu.core_type = #tpu.core_type<tc>, window_params = [{transform_indices = @transform_0, window_bounds = array<i64: 1, 8, 8>}, {transform_indices = @transform_1, window_bounds = array<i64: 8, 32>}, {pipeline_mode = #tpu.pipeline_mode<synchronous>, transform_indices = @transform_2, window_bounds = array<i64: 32, 128>}, {pipeline_mode = #tpu.pipeline_mode<synchronous>, transform_indices = @transform_3, window_bounds = array<i64: 1, 128>}, {transform_indices = @transform_4, window_bounds = array<i64: 8, 128>}]} {
    %c0_i32 = arith.constant 0 : i32
    %0 = arith.cmpi eq, %arg1, %c0_i32 : i32
    %1 = arith.extui %0 : i1 to i32
    %c0_i32_0 = arith.constant 0 : i32
    %2 = arith.cmpi ne, %1, %c0_i32_0 : i32
    scf.if %2 {
      %cst_10 = arith.constant 0.000000e+00 : f32
      %12 = vector.broadcast %cst_10 : f32 to vector<8x128xf32>
      %c0_11 = arith.constant 0 : index
      %c0_12 = arith.constant 0 : index
      %13 = vector.load %arg7[%c0_11, %c0_12] : memref<8x128xf32, #tpu.memory_space<vmem>>, vector<8x128xf32>
      tpu.vector_store %arg7[%c0_11, %c0_12], %12 {strides = array<i32>} : memref<8x128xf32, #tpu.memory_space<vmem>>, vector<8x128xf32>,
    } else {
    }
    %c0 = arith.constant 0 : index
    %c0_1 = arith.constant 0 : index
    %3 = vector.load %arg7[%c0, %c0_1] : memref<8x128xf32, #tpu.memory_space<vmem>>, vector<8x128xf32>
    %c0_2 = arith.constant 0 : index
    %c0_3 = arith.constant 0 : index
    %4 = vector.load %arg3[%c0_2, %c0_3] : memref<8x32xf32, #tpu.memory_space<vmem>>, vector<8x32xf32>
    %c0_4 = arith.constant 0 : index
    %c0_5 = arith.constant 0 : index
    %5 = vector.load %arg4[%c0_4, %c0_5] : memref<32x128xf32, #tpu.memory_space<vmem>>, vector<32x128xf32>
    %cst = arith.constant dense<0.000000e+00> : vector<8x128xf32>
    %6 = tpu.matmul %4, %5, %cst {dimension_numbers = #tpu.dot_dimension_numbers<[1], [0], [0], [1], [0, 0, 1, 1], [], []>} : vector<8x32xf32>, vector<32x128xf32>, vector<8x128xf32> -> vector<8x128xf32>
    %7 = arith.addf %3, %6 : vector<8x128xf32>
    %c0_6 = arith.constant 0 : index
    %c0_7 = arith.constant 0 : index
    %8 = vector.load %arg7[%c0_6, %c0_7] : memref<8x128xf32, #tpu.memory_space<vmem>>, vector<8x128xf32>
    tpu.vector_store %arg7[%c0_6, %c0_7], %7 {strides = array<i32>} : memref<8x128xf32, #tpu.memory_space<vmem>>, vector<8x128xf32>,
    %c0_i32_8 = arith.constant 0 : i32
    %9 = arith.cmpi eq, %arg1, %c0_i32_8 : i32
    %10 = arith.extui %9 : i1 to i32
    %c0_i32_9 = arith.constant 0 : i32
    %11 = arith.cmpi ne, %10, %c0_i32_9 : i32
    scf.if %11 {
      %c0_10 = arith.constant 0 : index
      %c0_11 = arith.constant 0 : index
      %c0_12 = arith.constant 0 : index
      %12 = vector.load %arg2[%c0_10, %c0_11, %c0_12] : memref<1x8x8xf32, #tpu.memory_space<vmem>>, vector<1x8x8xf32>
      %c0_13 = arith.constant 0 : index
      %c0_14 = arith.constant 0 : index
      %13 = vector.load %arg7[%c0_13, %c0_14] : memref<8x128xf32, #tpu.memory_space<vmem>>, vector<8x128xf32>
      %14 = vector.shape_cast %13 : vector<8x128xf32> to vector<1x8x128xf32>
      %cst_15 = arith.constant 0.000000e+00 : f32
      %15 = vector.broadcast %cst_15 : f32 to vector<1x8x128xf32>
      %16 = vector.extract_strided_slice %14 {offsets = [0, 0, 0], sizes = [1, 1, 128], strides = [1, 1, 1]} : vector<1x8x128xf32> to vector<1x1x128xf32>
      %17 = vector.extract_strided_slice %12 {offsets = [0, 0, 0], sizes = [1, 8, 1], strides = [1, 1, 1]} : vector<1x8x8xf32> to vector<1x8x1xf32>
      %18 = vector.broadcast %17 : vector<1x8x1xf32> to vector<1x8x128xf32>
      %19 = vector.broadcast %16 : vector<1x1x128xf32> to vector<1x8x128xf32>
      %20 = arith.mulf %18, %19 : vector<1x8x128xf32>
      %21 = arith.addf %15, %20 : vector<1x8x128xf32>
      %22 = vector.extract_strided_slice %14 {offsets = [0, 1, 0], sizes = [1, 1, 128], strides = [1, 1, 1]} : vector<1x8x128xf32> to vector<1x1x128xf32>
      %23 = vector.extract_strided_slice %12 {offsets = [0, 0, 1], sizes = [1, 8, 1], strides = [1, 1, 1]} : vector<1x8x8xf32> to vector<1x8x1xf32>
      %24 = vector.broadcast %23 : vector<1x8x1xf32> to vector<1x8x128xf32>
      %25 = vector.broadcast %22 : vector<1x1x128xf32> to vector<1x8x128xf32>
      %26 = arith.mulf %24, %25 : vector<1x8x128xf32>
      %27 = arith.addf %21, %26 : vector<1x8x128xf32>
      %28 = vector.extract_strided_slice %14 {offsets = [0, 2, 0], sizes = [1, 1, 128], strides = [1, 1, 1]} : vector<1x8x128xf32> to vector<1x1x128xf32>
      %29 = vector.extract_strided_slice %12 {offsets = [0, 0, 2], sizes = [1, 8, 1], strides = [1, 1, 1]} : vector<1x8x8xf32> to vector<1x8x1xf32>
      %30 = vector.broadcast %29 : vector<1x8x1xf32> to vector<1x8x128xf32>
      %31 = vector.broadcast %28 : vector<1x1x128xf32> to vector<1x8x128xf32>
      %32 = arith.mulf %30, %31 : vector<1x8x128xf32>
      %33 = arith.addf %27, %32 : vector<1x8x128xf32>
      %34 = vector.extract_strided_slice %14 {offsets = [0, 3, 0], sizes = [1, 1, 128], strides = [1, 1, 1]} : vector<1x8x128xf32> to vector<1x1x128xf32>
      %35 = vector.extract_strided_slice %12 {offsets = [0, 0, 3], sizes = [1, 8, 1], strides = [1, 1, 1]} : vector<1x8x8xf32> to vector<1x8x1xf32>
      %36 = vector.broadcast %35 : vector<1x8x1xf32> to vector<1x8x128xf32>
      %37 = vector.broadcast %34 : vector<1x1x128xf32> to vector<1x8x128xf32>
      %38 = arith.mulf %36, %37 : vector<1x8x128xf32>
      %39 = arith.addf %33, %38 : vector<1x8x128xf32>
      %40 = vector.extract_strided_slice %14 {offsets = [0, 4, 0], sizes = [1, 1, 128], strides = [1, 1, 1]} : vector<1x8x128xf32> to vector<1x1x128xf32>
      %41 = vector.extract_strided_slice %12 {offsets = [0, 0, 4], sizes = [1, 8, 1], strides = [1, 1, 1]} : vector<1x8x8xf32> to vector<1x8x1xf32>
      %42 = vector.broadcast %41 : vector<1x8x1xf32> to vector<1x8x128xf32>
      %43 = vector.broadcast %40 : vector<1x1x128xf32> to vector<1x8x128xf32>
      %44 = arith.mulf %42, %43 : vector<1x8x128xf32>
      %45 = arith.addf %39, %44 : vector<1x8x128xf32>
      %46 = vector.extract_strided_slice %14 {offsets = [0, 5, 0], sizes = [1, 1, 128], strides = [1, 1, 1]} : vector<1x8x128xf32> to vector<1x1x128xf32>
      %47 = vector.extract_strided_slice %12 {offsets = [0, 0, 5], sizes = [1, 8, 1], strides = [1, 1, 1]} : vector<1x8x8xf32> to vector<1x8x1xf32>
      %48 = vector.broadcast %47 : vector<1x8x1xf32> to vector<1x8x128xf32>
      %49 = vector.broadcast %46 : vector<1x1x128xf32> to vector<1x8x128xf32>
      %50 = arith.mulf %48, %49 : vector<1x8x128xf32>
      %51 = arith.addf %45, %50 : vector<1x8x128xf32>
      %52 = vector.extract_strided_slice %14 {offsets = [0, 6, 0], sizes = [1, 1, 128], strides = [1, 1, 1]} : vector<1x8x128xf32> to vector<1x1x128xf32>
      %53 = vector.extract_strided_slice %12 {offsets = [0, 0, 6], sizes = [1, 8, 1], strides = [1, 1, 1]} : vector<1x8x8xf32> to vector<1x8x1xf32>
      %54 = vector.broadcast %53 : vector<1x8x1xf32> to vector<1x8x128xf32>
      %55 = vector.broadcast %52 : vector<1x1x128xf32> to vector<1x8x128xf32>
      %56 = arith.mulf %54, %55 : vector<1x8x128xf32>
      %57 = arith.addf %51, %56 : vector<1x8x128xf32>
      %58 = vector.extract_strided_slice %14 {offsets = [0, 7, 0], sizes = [1, 1, 128], strides = [1, 1, 1]} : vector<1x8x128xf32> to vector<1x1x128xf32>
      %59 = vector.extract_strided_slice %12 {offsets = [0, 0, 7], sizes = [1, 8, 1], strides = [1, 1, 1]} : vector<1x8x8xf32> to vector<1x8x1xf32>
      %60 = vector.broadcast %59 : vector<1x8x1xf32> to vector<1x8x128xf32>
      %61 = vector.broadcast %58 : vector<1x1x128xf32> to vector<1x8x128xf32>
      %62 = arith.mulf %60, %61 : vector<1x8x128xf32>
      %63 = arith.addf %57, %62 : vector<1x8x128xf32>
      %64 = vector.shape_cast %63 : vector<1x8x128xf32> to vector<8x128xf32>
      %c0_16 = arith.constant 0 : index
      %c0_17 = arith.constant 0 : index
      %65 = vector.load %arg5[%c0_16, %c0_17] : memref<1x128xf32, #tpu.memory_space<vmem>>, vector<1x128xf32>
      %66 = vector.broadcast %65 : vector<1x128xf32> to vector<8x128xf32>
      %67 = arith.addf %64, %66 : vector<8x128xf32>
      %c0_18 = arith.constant 0 : index
      %c0_19 = arith.constant 0 : index
      %68 = vector.load %arg6[%c0_18, %c0_19] : memref<8x128xf32, #tpu.memory_space<vmem>>, vector<8x128xf32>
      tpu.vector_store %arg6[%c0_18, %c0_19], %67 {strides = array<i32>} : memref<8x128xf32, #tpu.memory_space<vmem>>, vector<8x128xf32>,
    } else {
    }
    return
  }
  func.func @transform_0(%arg0: i32, %arg1: i32) -> (i32, i32, i32) {
    %c0_i32 = arith.constant 0 : i32
    %c0_i32_0 = arith.constant 0 : i32
    %c0_i32_1 = arith.constant 0 : i32
    return %arg0, %c0_i32, %c0_i32_0 : i32, i32, i32
  }
  func.func @transform_1(%arg0: i32, %arg1: i32) -> (i32, i32) {
    %c0_i32 = arith.constant 0 : i32
    return %arg0, %arg1 : i32, i32
  }
  func.func @transform_2(%arg0: i32, %arg1: i32) -> (i32, i32) {
    %c0_i32 = arith.constant 0 : i32
    %c0_i32_0 = arith.constant 0 : i32
    %c0_i32_1 = arith.constant 0 : i32
    return %c0_i32, %c0_i32_0 : i32, i32
  }
  func.func @transform_3(%arg0: i32, %arg1: i32) -> (i32, i32) {
    %c0_i32 = arith.constant 0 : i32
    %c0_i32_0 = arith.constant 0 : i32
    %c0_i32_1 = arith.constant 0 : i32
    return %c0_i32, %c0_i32_0 : i32, i32
  }
  func.func @transform_4(%arg0: i32, %arg1: i32) -> (i32, i32) {
    %c0_i32 = arith.constant 0 : i32
    %c0_i32_0 = arith.constant 0 : i32
    return %arg0, %c0_i32 : i32, i32
  }
}

module attributes {stable_mosaic.version = 11 : i64} {
  func.func @_gcn_kernel(%arg0: i32, %arg1: i32, %arg2: memref<1x8x8xf32, #tpu.memory_space<vmem>>, %arg3: memref<8x32xf32, #tpu.memory_space<vmem>>, %arg4: memref<32x128xf32, #tpu.memory_space<vmem>>, %arg5: memref<1x128xf32, #tpu.memory_space<vmem>>, %arg6: memref<8x128xf32, #tpu.memory_space<vmem>>, %arg7: memref<8x128xf32, #tpu.memory_space<vmem>>) attributes {dimension_semantics = [#tpu.dimension_semantics<parallel>, #tpu.dimension_semantics<arbitrary>], iteration_bounds = array<i64: 2, 1>, scalar_prefetch = 0 : i64, scratch_operands = 1 : i64, tpu.core_type = #tpu.core_type<tc>, window_params = [{transform_indices = @transform_0, window_bounds = array<i64: 1, 8, 8>}, {transform_indices = @transform_1, window_bounds = array<i64: 8, 32>}, {pipeline_mode = #tpu.pipeline_mode<synchronous>, transform_indices = @transform_2, window_bounds = array<i64: 32, 128>}, {pipeline_mode = #tpu.pipeline_mode<synchronous>, transform_indices = @transform_3, window_bounds = array<i64: 1, 128>}, {transform_indices = @transform_4, window_bounds = array<i64: 8, 128>}]} {
    %c0_i32 = arith.constant 0 : i32
    %0 = arith.cmpi eq, %arg1, %c0_i32 : i32
    %1 = arith.extui %0 : i1 to i32
    %c0_i32_0 = arith.constant 0 : i32
    %2 = arith.cmpi ne, %1, %c0_i32_0 : i32
    scf.if %2 {
      %cst_10 = arith.constant 0.000000e+00 : f32
      %12 = vector.broadcast %cst_10 : f32 to vector<8x128xf32>
      %c0_11 = arith.constant 0 : index
      %c0_12 = arith.constant 0 : index
      %13 = vector.load %arg7[%c0_11, %c0_12] : memref<8x128xf32, #tpu.memory_space<vmem>>, vector<8x128xf32>
      tpu.vector_store %arg7[%c0_11, %c0_12], %12 {strides = array<i32>} : memref<8x128xf32, #tpu.memory_space<vmem>>, vector<8x128xf32>,
    } else {
    }
    %c0 = arith.constant 0 : index
    %c0_1 = arith.constant 0 : index
    %3 = vector.load %arg7[%c0, %c0_1] : memref<8x128xf32, #tpu.memory_space<vmem>>, vector<8x128xf32>
    %c0_2 = arith.constant 0 : index
    %c0_3 = arith.constant 0 : index
    %4 = vector.load %arg3[%c0_2, %c0_3] : memref<8x32xf32, #tpu.memory_space<vmem>>, vector<8x32xf32>
    %c0_4 = arith.constant 0 : index
    %c0_5 = arith.constant 0 : index
    %5 = vector.load %arg4[%c0_4, %c0_5] : memref<32x128xf32, #tpu.memory_space<vmem>>, vector<32x128xf32>
    %cst = arith.constant dense<0.000000e+00> : vector<8x128xf32>
    %6 = tpu.matmul %4, %5, %cst {dimension_numbers = #tpu.dot_dimension_numbers<[1], [0], [0], [1], [0, 0, 1, 1], [], []>} : vector<8x32xf32>, vector<32x128xf32>, vector<8x128xf32> -> vector<8x128xf32>
    %7 = arith.addf %3, %6 : vector<8x128xf32>
    %c0_6 = arith.constant 0 : index
    %c0_7 = arith.constant 0 : index
    %8 = vector.load %arg7[%c0_6, %c0_7] : memref<8x128xf32, #tpu.memory_space<vmem>>, vector<8x128xf32>
    tpu.vector_store %arg7[%c0_6, %c0_7], %7 {strides = array<i32>} : memref<8x128xf32, #tpu.memory_space<vmem>>, vector<8x128xf32>,
    %c0_i32_8 = arith.constant 0 : i32
    %9 = arith.cmpi eq, %arg1, %c0_i32_8 : i32
    %10 = arith.extui %9 : i1 to i32
    %c0_i32_9 = arith.constant 0 : i32
    %11 = arith.cmpi ne, %10, %c0_i32_9 : i32
    scf.if %11 {
      %c0_10 = arith.constant 0 : index
      %c0_11 = arith.constant 0 : index
      %c0_12 = arith.constant 0 : index
      %12 = vector.load %arg2[%c0_10, %c0_11, %c0_12] : memref<1x8x8xf32, #tpu.memory_space<vmem>>, vector<1x8x8xf32>
      %c0_13 = arith.constant 0 : index
      %c0_14 = arith.constant 0 : index
      %13 = vector.load %arg7[%c0_13, %c0_14] : memref<8x128xf32, #tpu.memory_space<vmem>>, vector<8x128xf32>
      %14 = vector.shape_cast %13 : vector<8x128xf32> to vector<1x8x128xf32>
      %cst_15 = arith.constant 0.000000e+00 : f32
      %15 = vector.broadcast %cst_15 : f32 to vector<1x8x128xf32>
      %16 = vector.extract_strided_slice %14 {offsets = [0, 0, 0], sizes = [1, 1, 128], strides = [1, 1, 1]} : vector<1x8x128xf32> to vector<1x1x128xf32>
      %17 = vector.extract_strided_slice %12 {offsets = [0, 0, 0], sizes = [1, 8, 1], strides = [1, 1, 1]} : vector<1x8x8xf32> to vector<1x8x1xf32>
      %18 = vector.broadcast %17 : vector<1x8x1xf32> to vector<1x8x128xf32>
      %19 = vector.broadcast %16 : vector<1x1x128xf32> to vector<1x8x128xf32>
      %20 = arith.mulf %18, %19 : vector<1x8x128xf32>
      %21 = arith.addf %15, %20 : vector<1x8x128xf32>
      %22 = vector.extract_strided_slice %14 {offsets = [0, 1, 0], sizes = [1, 1, 128], strides = [1, 1, 1]} : vector<1x8x128xf32> to vector<1x1x128xf32>
      %23 = vector.extract_strided_slice %12 {offsets = [0, 0, 1], sizes = [1, 8, 1], strides = [1, 1, 1]} : vector<1x8x8xf32> to vector<1x8x1xf32>
      %24 = vector.broadcast %23 : vector<1x8x1xf32> to vector<1x8x128xf32>
      %25 = vector.broadcast %22 : vector<1x1x128xf32> to vector<1x8x128xf32>
      %26 = arith.mulf %24, %25 : vector<1x8x128xf32>
      %27 = arith.addf %21, %26 : vector<1x8x128xf32>
      %28 = vector.extract_strided_slice %14 {offsets = [0, 2, 0], sizes = [1, 1, 128], strides = [1, 1, 1]} : vector<1x8x128xf32> to vector<1x1x128xf32>
      %29 = vector.extract_strided_slice %12 {offsets = [0, 0, 2], sizes = [1, 8, 1], strides = [1, 1, 1]} : vector<1x8x8xf32> to vector<1x8x1xf32>
      %30 = vector.broadcast %29 : vector<1x8x1xf32> to vector<1x8x128xf32>
      %31 = vector.broadcast %28 : vector<1x1x128xf32> to vector<1x8x128xf32>
      %32 = arith.mulf %30, %31 : vector<1x8x128xf32>
      %33 = arith.addf %27, %32 : vector<1x8x128xf32>
      %34 = vector.extract_strided_slice %14 {offsets = [0, 3, 0], sizes = [1, 1, 128], strides = [1, 1, 1]} : vector<1x8x128xf32> to vector<1x1x128xf32>
      %35 = vector.extract_strided_slice %12 {offsets = [0, 0, 3], sizes = [1, 8, 1], strides = [1, 1, 1]} : vector<1x8x8xf32> to vector<1x8x1xf32>
      %36 = vector.broadcast %35 : vector<1x8x1xf32> to vector<1x8x128xf32>
      %37 = vector.broadcast %34 : vector<1x1x128xf32> to vector<1x8x128xf32>
      %38 = arith.mulf %36, %37 : vector<1x8x128xf32>
      %39 = arith.addf %33, %38 : vector<1x8x128xf32>
      %40 = vector.extract_strided_slice %14 {offsets = [0, 4, 0], sizes = [1, 1, 128], strides = [1, 1, 1]} : vector<1x8x128xf32> to vector<1x1x128xf32>
      %41 = vector.extract_strided_slice %12 {offsets = [0, 0, 4], sizes = [1, 8, 1], strides = [1, 1, 1]} : vector<1x8x8xf32> to vector<1x8x1xf32>
      %42 = vector.broadcast %41 : vector<1x8x1xf32> to vector<1x8x128xf32>
      %43 = vector.broadcast %40 : vector<1x1x128xf32> to vector<1x8x128xf32>
      %44 = arith.mulf %42, %43 : vector<1x8x128xf32>
      %45 = arith.addf %39, %44 : vector<1x8x128xf32>
      %46 = vector.extract_strided_slice %14 {offsets = [0, 5, 0], sizes = [1, 1, 128], strides = [1, 1, 1]} : vector<1x8x128xf32> to vector<1x1x128xf32>
      %47 = vector.extract_strided_slice %12 {offsets = [0, 0, 5], sizes = [1, 8, 1], strides = [1, 1, 1]} : vector<1x8x8xf32> to vector<1x8x1xf32>
      %48 = vector.broadcast %47 : vector<1x8x1xf32> to vector<1x8x128xf32>
      %49 = vector.broadcast %46 : vector<1x1x128xf32> to vector<1x8x128xf32>
      %50 = arith.mulf %48, %49 : vector<1x8x128xf32>
      %51 = arith.addf %45, %50 : vector<1x8x128xf32>
      %52 = vector.extract_strided_slice %14 {offsets = [0, 6, 0], sizes = [1, 1, 128], strides = [1, 1, 1]} : vector<1x8x128xf32> to vector<1x1x128xf32>
      %53 = vector.extract_strided_slice %12 {offsets = [0, 0, 6], sizes = [1, 8, 1], strides = [1, 1, 1]} : vector<1x8x8xf32> to vector<1x8x1xf32>
      %54 = vector.broadcast %53 : vector<1x8x1xf32> to vector<1x8x128xf32>
      %55 = vector.broadcast %52 : vector<1x1x128xf32> to vector<1x8x128xf32>
      %56 = arith.mulf %54, %55 : vector<1x8x128xf32>
      %57 = arith.addf %51, %56 : vector<1x8x128xf32>
      %58 = vector.extract_strided_slice %14 {offsets = [0, 7, 0], sizes = [1, 1, 128], strides = [1, 1, 1]} : vector<1x8x128xf32> to vector<1x1x128xf32>
      %59 = vector.extract_strided_slice %12 {offsets = [0, 0, 7], sizes = [1, 8, 1], strides = [1, 1, 1]} : vector<1x8x8xf32> to vector<1x8x1xf32>
      %60 = vector.broadcast %59 : vector<1x8x1xf32> to vector<1x8x128xf32>
      %61 = vector.broadcast %58 : vector<1x1x128xf32> to vector<1x8x128xf32>
      %62 = arith.mulf %60, %61 : vector<1x8x128xf32>
      %63 = arith.addf %57, %62 : vector<1x8x128xf32>
      %64 = vector.shape_cast %63 : vector<1x8x128xf32> to vector<8x128xf32>
      %c0_16 = arith.constant 0 : index
      %c0_17 = arith.constant 0 : index
      %65 = vector.load %arg5[%c0_16, %c0_17] : memref<1x128xf32, #tpu.memory_space<vmem>>, vector<1x128xf32>
      %66 = vector.broadcast %65 : vector<1x128xf32> to vector<8x128xf32>
      %67 = arith.addf %64, %66 : vector<8x128xf32>
      %c0_18 = arith.constant 0 : index
      %c0_19 = arith.constant 0 : index
      %68 = vector.load %arg6[%c0_18, %c0_19] : memref<8x128xf32, #tpu.memory_space<vmem>>, vector<8x128xf32>
      tpu.vector_store %arg6[%c0_18, %c0_19], %67 {strides = array<i32>} : memref<8x128xf32, #tpu.memory_space<vmem>>, vector<8x128xf32>,
    } else {
    }
    return
  }
  func.func @transform_0(%arg0: i32, %arg1: i32) -> (i32, i32, i32) {
    %c0_i32 = arith.constant 0 : i32
    %c0_i32_0 = arith.constant 0 : i32
    %c0_i32_1 = arith.constant 0 : i32
    return %arg0, %c0_i32, %c0_i32_0 : i32, i32, i32
  }
  func.func @transform_1(%arg0: i32, %arg1: i32) -> (i32, i32) {
    %c0_i32 = arith.constant 0 : i32
    return %arg0, %arg1 : i32, i32
  }
  func.func @transform_2(%arg0: i32, %arg1: i32) -> (i32, i32) {
    %c0_i32 = arith.constant 0 : i32
    %c0_i32_0 = arith.constant 0 : i32
    %c0_i32_1 = arith.constant 0 : i32
    return %c0_i32, %c0_i32_0 : i32, i32
  }
  func.func @transform_3(%arg0: i32, %arg1: i32) -> (i32, i32) {
    %c0_i32 = arith.constant 0 : i32
    %c0_i32_0 = arith.constant 0 : i32
    %c0_i32_1 = arith.constant 0 : i32
    return %c0_i32, %c0_i32_0 : i32, i32
  }
  func.func @transform_4(%arg0: i32, %arg1: i32) -> (i32, i32) {
    %c0_i32 = arith.constant 0 : i32
    %c0_i32_0 = arith.constant 0 : i32
    return %arg0, %c0_i32 : i32, i32
  }
}

</mosaic_0001>

<bundles_post_ra>
// kernel: tpu_custom_call.1
= control target key start
LH: loop header
LB: loop body
LE: loop exit
PB: predicated region body
PF: predicated region fallthrough
CT: control target
= control target key end

     0   :  { %s1125_s0 = inlined_call_operand.hbm [shape: f32[2,8,8], index: 0, kind: input, shape index: {}]   ;;  %s1126_s1 = inlined_call_operand.hbm [shape: f32[16,32], index: 1, kind: input, shape index: {}]   ;;  %s1127_s2 = inlined_call_operand.hbm [shape: f32[32,128], index: 2, kind: input, shape index: {}]   ;;  %s1128_s3 = inlined_call_operand.vmem [shape: f32[1,128], index: 3, kind: input, shape index: {}]   ;;  %s1129_s4 = inlined_call_operand.hbm [shape: f32[16,128], index: 4, kind: output, shape index: {}]  }
   0x1   :  { %1131 = sst [smem:[#allocation15_spill]] %s1127_s2 }
   0x2   :  { %9 = vsyncpa [#allocation4], 0 }
   0x3   :  { %11 = vsyncpa [#allocation4 + $0x1], 0 }
   0x4   :  { %12 = vsyncpa [#allocation7], 0 }
   0x5   :  { %14 = vsyncpa [#allocation7 + $0x1], 0 }
   0x6   :  { %15 = vsyncpa [#allocation5], 0 }
   0x7   :  { %17 = vsyncpa [#allocation5 + $0x1], 0  ;;  %s934_s15 = smov 0   ;;  %s936_s16 = smov 0  }
   0x8   :  { %s938_s17 = smov 0   ;;  %s940_s18 = smov 0  }
   0x9   :  { %s942_s19 = smov 0   ;;  %s944_s20 = smov 0  }
   0xa LB: > { %s965_s21 = sadd.s32 4294967295, %s891_s20   ;;  %s587_s22 = sadd.s32 4294967294, %s891_s20   ;;  %s891_s20 = sphi %s944_s20, %s23_s20   ;;  %s887_s19 = sphi %s942_s19, %s1149_s19   ;;  %s883_s18 = sphi %s940_s18, %s1148_s18   ;;  %s879_s17 = sphi %s938_s17, %s1147_s17   ;;  %s875_s16 = sphi %s936_s16, %s1146_s16   ;;  %s871_s15 = sphi %s934_s15, %s1145_s15  }
   0xb   : > { %p55_p0 = scmp.ne.s32.totalorder %s875_s16, %s871_s15  ;;  %p56_p1 = scmp.eq.s32.totalorder %s965_s21, 0 }
   0xc   : > { %p155_p3 = scmp.eq.s32.totalorder %s587_s22, 1  ;;  %p588_p5 = scmp.ge.s32.totalorder %s891_s20, 1 }
   0xd   : > { %p974_p4 = por %p56_p1, %p55_p0  ;;  %p162_p7 = scmp.lt.s32.totalorder %s891_s20, 3 }
   0xe   : > { %p979_p6 = por %p155_p3, %p55_p0  ;;  %s893_s26 = smov [#allocation8]  }
   0xf   : > { %p984_p8 = pnand %p588_p5, %p162_p7  ;;  %s174_s27 = sshll.u32 %s893_s26, 4  ;;  %s175_s27 = int_to_ptr.vmem [resolvable:$true] %s174_s27 }
  0x10   : > { %s1133_s24 = scalar_select %p979_p6, 1, 0 }
  0x11   : > { %p632_p9 = pneg %p984_p8  ;;  %s35_s29 = sadd.s32 1, %s887_s19 }
  0x12   : > { %s732_s30 = scalar_lea.vmem %s175_s27, 512  ;;  %p740_p5 = scmp.lt.s32.totalorder %s175_s27, %s175_s27 }
  0x13   : > { %p993_p11 = pnand %p632_p9, %p56_p1  ;;  %p733_p13 = scmp.ne.s32.totalorder %s175_s27, %s732_s30 }
  0x14   : > { %p741_p7 = scmp.lt.s32.totalorder %s732_s30, %s732_s30 }
  0x15   : > { %p723_p12 = pneg %p993_p11 }
  0x16   : > { %p742_p2 = por %p741_p7, %p740_p5 }
  0x17   : > { %p735_p0 = pnand %p733_p13, %p723_p12 }
  0x19   : > { %p736_p3 = pneg %p735_p0 }
  0x1b   : > { %p743_p6 = pnand %p742_p2, %p736_p3 }
  0x1d   : > { %746 = shalt.err (!%p743_p6)
}
  0x1e   : > { %s894_s5 = smov 128   ;;  %s895_s6 = smov 8  }
  0x1f   : > { %s1136_s2 = sld [smem:[#allocation15_spill]]  ;;  %p37_p2 = scmp.ge.s32.totalorder %s35_s29, 2 }
  0x20   : > { %s42_s9 = sadd.s32 1, %s879_s17  ;;  %p49_p6 = scmp.ne.s32.totalorder %s879_s17, %s875_s16 }
  0x21   : > { %p50_p9 = scmp.eq.s32.totalorder %s891_s20, 0  ;;  %s1151_s29 = smov (%p37_p2, %s35_s29), 0 }
  0x22   : > { %1137 = sst [smem:[#allocation14_spill]] %s1151_s29  ;;  %p1139_p13 = scmp.eq.s32.totalorder %s965_s21, 1 }
  0x23   : > { %p1011_p12 = por %p50_p9, %p49_p6  ;;  %s39_s12 = ssub.s32 %s887_s19, %s1151_s29 }
  0x24   : > { %p1017_p0 = por %p1139_p13, %p49_p6  ;;  %p40_p3 = scmp.eq.s32.totalorder %s39_s12, 0 }
  0x25   : > { %635 = dma.hbm_to_vmem [thread:$0]  (!%p993_p11), %s1136_s2, 512, %s175_s27, [#allocation7], %s894_s5, %s894_s5, %s895_s6  }
  0x26   : > { %p648_p11 = scmp.lt.s32.totalorder %s891_s20, 2  ;;  %s191_s13 = sand.u32 1, %s879_s17  }
  0x27   : > { %s591_s14 = sshll.u32 %s191_s13, 3  ;;  %s592_s26 = sshll.u32 %s887_s19, 7 }
  0x28   : > { %s1026_s22 = scalar_select %p40_p3, %s879_s17, %s42_s9  }
  0x29   : > { %s200_s30 = scalar_lea.hbm %s1125_s0, %s592_s26  ;;  %s195_s5 = scalar_lea.vmem [#allocation3], %s591_s14 }
  0x2a   : > { %s202_s6 = sshll.u32 %s195_s5, 4  ;;  %p1034_p5 = pnand %p648_p11, %p1011_p12  ;;  %s203_s6 = int_to_ptr.vmem [resolvable:$true] %s202_s6 }
  0x2b   : > { %s1041_s9 = scalar_lea.hbm %s1126_s1, %s592_s26  ;;  %s209_s12 = sand.u32 1, %s891_s20  }
  0x2c   : > { %s192_s29 = scalar_lea.sflag [#allocation4], %s191_s13  ;;  %p749_p7 = pneg %p1034_p5 }
  0x2d   : > { %s760_s27 = scalar_lea.vmem %s203_s6, 128  ;;  %s896_s10 = smov [#allocation3]  }
  0x2e   : > { %p761_p2 = scmp.ne.s32.totalorder %s203_s6, %s760_s27  ;;  %s765_s28 = sshll.u32 %s896_s10, 4  ;;  %s766_s28 = int_to_ptr.vmem [resolvable:$false] %s765_s28 }
  0x2f   : > { %s767_s5 = scalar_lea.vmem %s766_s28, 256  ;;  %p768_p12 = scmp.lt.s32.totalorder %s203_s6, %s766_s28 }
  0x30   : > { %p763_p6 = pnand %p761_p2, %p749_p7  ;;  %p769_p13 = scmp.lt.s32.totalorder %s767_s5, %s760_s27 }
  0x32   : > { %p764_p9 = pneg %p763_p6  ;;  %p770_p11 = por %p769_p13, %p768_p12 }
  0x34   : > { %p771_p3 = pnand %p770_p11, %p764_p9 }
  0x36   : > { %774 = shalt.err (!%p771_p3)
}
  0x37   : > { %639 = dma.hbm_to_vmem [thread:$0]  (!%p1034_p5), %s200_s30, 128, %s203_s6, %s192_s29  }
  0x38   : > { %s213_s2 = scalar_lea.vmem [#allocation6], %s591_s14  ;;  %s210_s26 = scalar_lea.sflag [#allocation7], %s209_s12 }
  0x39   : > { %s221_s13 = sshll.u32 %s213_s2, 4  ;;  %s897_s10 = smov [#allocation6]   ;;  %s222_s13 = int_to_ptr.vmem [resolvable:$true] %s221_s13 }
  0x3a   : > { %s788_s8 = scalar_lea.vmem %s222_s13, 128  ;;  %s793_s28 = sshll.u32 %s897_s10, 4  ;;  %s794_s28 = int_to_ptr.vmem [resolvable:$false] %s793_s28 }
  0x3b   : > { %p789_p2 = scmp.ne.s32.totalorder %s222_s13, %s788_s8  ;;  %s795_s27 = scalar_lea.vmem %s794_s28, 256 }
  0x3c   : > { %p796_p9 = scmp.lt.s32.totalorder %s222_s13, %s794_s28  ;;  %p797_p12 = scmp.lt.s32.totalorder %s795_s27, %s788_s8 }
  0x3d   : > { %p791_p6 = pnand %p789_p2, %p749_p7 }
  0x3e   : > { %p798_p13 = por %p797_p12, %p796_p9 }
  0x3f   : > { %p792_p10 = pneg %p791_p6 }
  0x41   : > { %p799_p11 = pnand %p798_p13, %p792_p10 }
  0x43   : > { %802 = shalt.err (!%p799_p11)
}
  0x44   : > { %642 = dma.hbm_to_vmem [thread:$0]  (!%p1034_p5), %s1041_s9, 128, %s222_s13, %s210_s26  }
  0x45   : > { %230 = sbr.rel (%p984_p8) target bundleno = 316 (0x13c), region = 36  ;;  %s1060_s29 = sand.u32 (!%p984_p8), 1, %s875_s16  }
  0x46   : > { %s1063_s14 = sshll.u32 (!%p984_p8), %s1060_s29, 3  ;;  %s233_s30 = scalar_lea.sflag (!%p984_p8), [#allocation4], %s1060_s29 }
  0x47   : > { %s236_s6 = scalar_lea.vmem (!%p984_p8), [#allocation3], %s1063_s14 }
  0x4a   : > { %854 = dma.done.wait (%p974_p4), %s233_s30, 128  }
  0x4b   : > { %856 = vsyncadd (%p974_p4), %s233_s30, 4294967168  ;;  %s241_s25 = sand.u32 1, %s965_s21   ;;  %s245_s9 = scalar_lea.vmem [#allocation6], %s1063_s14 }
  0x4c   : > { %s242_s7 = scalar_lea.sflag [#allocation7], %s241_s25 }
  0x4d   : > { %858 = dma.done.wait (%p974_p4), %s242_s7, 128  }
  0x4e   : > { %860 = vsyncadd (%p974_p4), %s242_s7, 4294967168 }
  0x4f   : > { %862 = dma.done.wait (%p56_p1), [#allocation7], 512  }
  0x50   : > { %864 = vsyncadd (%p56_p1), [#allocation7], 4294966784  ;;  %v898_v0 = vmov 0.0   ;;  %vm899_vm0 = vmmov 0   ;;  %v900_v1 = vmov 2   ;;  %v901_v2 = vmov 0  }
  0x51   : > { %611 = vmatprep.subr.mxu0 %v898_v0  ;;  %619 = vmatprep.mubr.msk.f32.mxu0 %vm899_vm0, %v898_v0  ;;  %v289_v3 = vld [vmem:[#allocation8 + $0x18] sm:$0xff]  ;;  %v288_v4 = vld [vmem:[#allocation8 + $0x10] sm:$0xff]  ;;  %v369_v5 = vld [vmem:[%s236_s6] sm:$0xff]  ;;  %vm290_vm1 = vcmask 261120   ;;  %v902_v9 = vmov 3   ;;  %v903_v10 = vmov 1   ;;  %v376_v16 = vlaneseq }
  0x52   : > { %714 = vset.pattern.permute.xlu1 %v900_v1  ;;  %712 = vset.pattern.permute.xlu0 %v901_v2  ;;  %v287_v6 = vld [vmem:[#allocation8 + $0x8] sm:$0xff]  ;;  %v286_v7 = vld [vmem:[#allocation8] sm:$0xff]  ;;  %v285_v8 = vld [vmem:[%s245_s9] sm:$0xff]  ;;  %v904_v11 = vmov 4   ;;  %v905_v12 = vmov 5   ;;  %v906_v13 = vmov 6  }
  0x53   : > { %612 = vmatpush3.msra.mxu0 %v289_v3  ;;  %393 = vperm.xlu1 %714, %v369_v5   ;;  %v907_v14 = vmov 7   ;;  %v377_v17 = vshrl.u32 %v376_v16, 7  ;;  %v601_v57 = vld [vmem:[%s1128_s3] ss:$0 sm:$0xff]  ;;  %s603_s12 = sshll.u32 %s883_s18, 7  ;;  %s278_s5 = scalar_lea.vmem [#allocation9], %s1063_s14 }
  0x54   : > { %613 = vmatprep.subr.mxu0 %v898_v0  ;;  %373 = vperm.xlu0 %712, %v369_v5   ;;  %s475_s2 = sshll.u32 %s278_s5, 4  ;;  %s473_s8 = scalar_lea.hbm %s1129_s4, %s603_s12  ;;  %s476_s2 = int_to_ptr.vmem [resolvable:$true] %s475_s2 }
  0x55   : > { %614 = vmatpush3.msra.mxu0 %v288_v4  ;;  %v378_v20 = vsub.s32 0, %v377_v17  ;;  %v388_v21 = vsub.s32 1, %v377_v17  ;;  %v398_v22 = vsub.s32 2, %v377_v17  ;;  %v408_v23 = vsub.s32 3, %v377_v17  ;;  %s462_s10 = scalar_lea.sflag [#allocation5], %s1060_s29  ;;  %s803_s28 = scalar_lea.vmem %s476_s2, 128 }
  0x56   : > { %615 = vmatprep.subr.mxu0 %v898_v0  ;;  %v418_v26 = vsub.s32 4, %v377_v17  ;;  %v428_v32 = vsub.s32 5, %v377_v17  ;;  %v438_v36 = vsub.s32 6, %v377_v17  ;;  %v448_v41 = vsub.s32 7, %v377_v17  ;;  %p804_p1 = scmp.ne.s32.totalorder %s476_s2, %s803_s28  ;;  %s908_s27 = smov [#allocation9]  }
  0x57   : > { %616 = vmatpush3.msra.mxu0 %v287_v6  ;;  %715 = vset.pattern.permute.xlu1 %v902_v9  ;;  %s807_s30 = sshll.u32 %s908_s27, 4  ;;  %s808_s30 = int_to_ptr.vmem [resolvable:$false] %s807_s30 }
  0x58   : > { %617 = vmatprep.subr.mxu0 %v898_v0  ;;  %403 = vperm.xlu1 %715, %v369_v5   ;;  %p805_p4 = pnand %p804_p1, %p1017_p0  ;;  %s809_s18 = scalar_lea.vmem %s808_s30, 256 }
  0x59   : > { %618 = vmatpush3.msra.mxu0 %v286_v7  ;;  %713 = vset.pattern.permute.xlu0 %v903_v10  ;;  %p810_p10 = scmp.lt.s32.totalorder %s476_s2, %s808_s30  ;;  %p811_p5 = scmp.lt.s32.totalorder %s809_s18, %s803_s28 }
  0x5a   : > { %620 = vmatmul.mubr.msk.f32.vlgmr.msra.gmra.mxu0 %vm290_vm1, %v285_v8  ;;  %383 = vperm.xlu0 %713, %v369_v5   ;;  %p806_p8 = pneg %p805_p4 }
  0x5b   : > { %p812_p7 = por %p811_p5, %p810_p10 }
  0x5c   : > { %716 = vset.pattern.permute.xlu1 %v904_v11 }
  0x5d   : > { %413 = vperm.xlu1 %716, %v369_v5   ;;  %p813_p3 = pnand %p812_p7, %p806_p8 }
  0x5e   : > { %717 = vset.pattern.permute.xlu0 %v905_v12 }
  0x5f   : > { %423 = vperm.xlu0 %717, %v369_v5  }
  0x61   : > { %718 = vset.pattern.permute.xlu1 %v906_v13 }
  0x62   : > { %433 = vperm.xlu1 %718, %v369_v5  }
  0x63   : > { %720 = vset.pattern.permute.xlu0 %v907_v14 }
  0x66   : > { %719 = vset.pattern.permute.xlu1 %v907_v14 }
  0x67   : > { %443 = vperm.xlu1 %719, %v369_v5  }
  0xce   : > { %v394_v15 = vpop.permute.xlu1 %393 }
  0xcf   : > { %v374_v19 = vpop.permute.xlu0 %373 }
  0xd3   : > { %v404_v18 = vpop.permute.xlu1 %403 }
  0xd5   : > { %v384_v30 = vpop.permute.xlu0 %383 }
  0xd8   : > { %v414_v24 = vpop.permute.xlu1 %413 }
  0xda   : > { %v424_v45 = vpop.permute.xlu0 %423 }
  0xdd   : > { %v434_v40 = vpop.permute.xlu1 %433 }
  0xe2   : > { %v444_v52 = vpop.permute.xlu1 %443 }
 0x11a   : > { %v360_v25 = vpop.f32.mrf.mxu0 }
 0x11b   : > { %v379_v27 = vrot.slane %v360_v25, %v378_v20  ;;  %v389_v28 = vrot.slane %v360_v25, %v388_v21  ;;  %v399_v29 = vrot.slane %v360_v25, %v398_v22  ;;  %v409_v35 = vrot.slane %v360_v25, %v408_v23 }
 0x11c   : > { %v621_v31 = vpop.f32.mrf.mxu0  ;;  %v419_v39 = vrot.slane %v360_v25, %v418_v26  ;;  %v429_v44 = vrot.slane %v360_v25, %v428_v32  ;;  %v439_v48 = vrot.slane %v360_v25, %v438_v36  ;;  %v449_v49 = vrot.slane %v360_v25, %v448_v41 }
 0x11d   : > { %v380_v33 = vmul.f32 %v379_v27, %v374_v19  ;;  %v390_v34 = vmul.f32 %v389_v28, %v384_v30  ;;  %v400_v38 = vmul.f32 %v399_v29, %v394_v15  ;;  %v410_v43 = vmul.f32 %v409_v35, %v404_v18 }
 0x11e   : > { %v420_v47 = vmul.f32 %v419_v39, %v414_v24  ;;  %v430_v51 = vmul.f32 %v429_v44, %v424_v45  ;;  %v440_v54 = vmul.f32 %v439_v48, %v434_v40  ;;  %v450_v55 = vmul.f32 %v449_v49, %v444_v52 }
 0x11f   : > { %v391_v37 = vadd.f32 %v390_v34, %v380_v33 }
 0x121   : > { %v401_v42 = vadd.f32 %v400_v38, %v391_v37 }
 0x123   : > { %v411_v46 = vadd.f32 %v410_v43, %v401_v42 }
 0x125   : > { %v421_v50 = vadd.f32 %v420_v47, %v411_v46 }
 0x127   : > { %v431_v53 = vadd.f32 %v430_v51, %v421_v50 }
 0x129   : > { %v441_v56 = vadd.f32 %v440_v54, %v431_v53 }
 0x12b   : > { %v451_v58 = vadd.f32 %v450_v55, %v441_v56 }
 0x12d   : > { %v459_v59 = vadd.f32 %v601_v57, %v451_v58 }
 0x12f   : > { %460 = vst [vmem:[%s278_s5] sm:$0xff] %v459_v59 }
 0x130   : > { %816 = shalt.err (!%p813_p3)
}
 0x131   : > { %s817_s14 = scalar_lea.hbm %s473_s8, 128  ;;  %s821_s25 = scalar_lea.hbm %s1129_s4, 256 }
 0x132   : > { %p818_p2 = scmp.ne.s32.totalorder %s473_s8, %s817_s14  ;;  %p822_p12 = scmp.lt.s32.totalorder %s473_s8, %s1129_s4 }
 0x133   : > { %p823_p13 = scmp.lt.s32.totalorder %s821_s25, %s817_s14 }
 0x134   : > { %p819_p6 = pnand %p818_p2, %p1017_p0 }
 0x135   : > { %p824_p11 = por %p823_p13, %p822_p12 }
 0x136   : > { %p820_p9 = pneg %p819_p6 }
 0x138   : > { %p825_p1 = pnand %p824_p11, %p820_p9 }
 0x13a   : > { %828 = shalt.err (!%p825_p1)
}
 0x13b   : > { %630 = dma.vmem_to_hbm [thread:$0]  (%p1017_p0), %s476_s2, 128, %s473_s8, %s462_s10  }
 0x13c PF: > { %s487_s21 = sand.u32 1, %s871_s15   ;;  %p1142_p4 = scmp.ne.s32.totalorder %s1133_s24, 0 }
 0x13d   : > { %p1143_p8 = scmp.ge.s32.totalorder %s891_s20, 2  ;;  %s488_s23 = scalar_lea.sflag [#allocation5], %s487_s21 }
 0x13f   : > { %p644_p10 = pnand %p1143_p8, %p1142_p4 }
 0x141   : > { %p645_p5 = pneg %p644_p10 }
 0x143   : > { %866 = dma.done.wait (%p645_p5), %s488_s23, 128  }
 0x144   : > { %868 = vsyncadd (%p645_p5), %s488_s23, 4294967168  ;;  %s23_s20 = sadd.s32 1, %s891_s20   ;;  %s1144_s11 = sld [smem:[#allocation14_spill]] }
 0x145   : > { %p20_p7 = scmp.ge.s32.totalorder %s23_s20, 4   ;;  %s1145_s15 = smov %s875_s16 }
 0x146   : > { %s1146_s16 = smov %s879_s17  ;;  %s1147_s17 = smov %s1026_s22 }
 0x147   : > { %s1148_s18 = smov %s887_s19  ;;  %22 = sbr.rel (!%p20_p7) target bundleno = 10 (0xa), region = 106 }
 0x14a   : > { %s1149_s19 = smov %s1144_s11 }
 0x14c   :  { %493 = vsyncpa [#allocation4], 1 }
 0x14d   :  { %495 = vsyncpa [#allocation4 + $0x1], 1 }
 0x14e   :  { %496 = vsyncpa [#allocation7], 1 }
 0x14f   :  { %498 = vsyncpa [#allocation7 + $0x1], 1 }
 0x150   :  { %499 = vsyncpa [#allocation5], 1 }
 0x151   :  { %501 = vsyncpa [#allocation5 + $0x1], 1 }

// kernel: tpu_custom_call.1
= control target key start
LH: loop header
LB: loop body
LE: loop exit
PB: predicated region body
PF: predicated region fallthrough
CT: control target
= control target key end

     0   :  { %s1125_s0 = inlined_call_operand.hbm [shape: f32[2,8,8], index: 0, kind: input, shape index: {}]   ;;  %s1126_s1 = inlined_call_operand.hbm [shape: f32[16,32], index: 1, kind: input, shape index: {}]   ;;  %s1127_s2 = inlined_call_operand.hbm [shape: f32[32,128], index: 2, kind: input, shape index: {}]   ;;  %s1128_s3 = inlined_call_operand.vmem [shape: f32[1,128], index: 3, kind: input, shape index: {}]   ;;  %s1129_s4 = inlined_call_operand.hbm [shape: f32[16,128], index: 4, kind: output, shape index: {}]  }
   0x1   :  { %1131 = sst [smem:[#allocation15_spill]] %s1127_s2 }
   0x2   :  { %9 = vsyncpa [#allocation4], 0 }
   0x3   :  { %11 = vsyncpa [#allocation4 + $0x1], 0 }
   0x4   :  { %12 = vsyncpa [#allocation7], 0 }
   0x5   :  { %14 = vsyncpa [#allocation7 + $0x1], 0 }
   0x6   :  { %15 = vsyncpa [#allocation5], 0 }
   0x7   :  { %17 = vsyncpa [#allocation5 + $0x1], 0  ;;  %s934_s15 = smov 0   ;;  %s936_s16 = smov 0  }
   0x8   :  { %s938_s17 = smov 0   ;;  %s940_s18 = smov 0  }
   0x9   :  { %s942_s19 = smov 0   ;;  %s944_s20 = smov 0  }
   0xa LB: > { %s965_s21 = sadd.s32 4294967295, %s891_s20   ;;  %s587_s22 = sadd.s32 4294967294, %s891_s20   ;;  %s891_s20 = sphi %s944_s20, %s23_s20   ;;  %s887_s19 = sphi %s942_s19, %s1149_s19   ;;  %s883_s18 = sphi %s940_s18, %s1148_s18   ;;  %s879_s17 = sphi %s938_s17, %s1147_s17   ;;  %s875_s16 = sphi %s936_s16, %s1146_s16   ;;  %s871_s15 = sphi %s934_s15, %s1145_s15  }
   0xb   : > { %p55_p0 = scmp.ne.s32.totalorder %s875_s16, %s871_s15  ;;  %p56_p1 = scmp.eq.s32.totalorder %s965_s21, 0 }
   0xc   : > { %p155_p3 = scmp.eq.s32.totalorder %s587_s22, 1  ;;  %p588_p5 = scmp.ge.s32.totalorder %s891_s20, 1 }
   0xd   : > { %p974_p4 = por %p56_p1, %p55_p0  ;;  %p162_p7 = scmp.lt.s32.totalorder %s891_s20, 3 }
   0xe   : > { %p979_p6 = por %p155_p3, %p55_p0  ;;  %s893_s26 = smov [#allocation8]  }
   0xf   : > { %p984_p8 = pnand %p588_p5, %p162_p7  ;;  %s174_s27 = sshll.u32 %s893_s26, 4  ;;  %s175_s27 = int_to_ptr.vmem [resolvable:$true] %s174_s27 }
  0x10   : > { %s1133_s24 = scalar_select %p979_p6, 1, 0 }
  0x11   : > { %p632_p9 = pneg %p984_p8  ;;  %s35_s29 = sadd.s32 1, %s887_s19 }
  0x12   : > { %s732_s30 = scalar_lea.vmem %s175_s27, 512  ;;  %p740_p5 = scmp.lt.s32.totalorder %s175_s27, %s175_s27 }
  0x13   : > { %p993_p11 = pnand %p632_p9, %p56_p1  ;;  %p733_p13 = scmp.ne.s32.totalorder %s175_s27, %s732_s30 }
  0x14   : > { %p741_p7 = scmp.lt.s32.totalorder %s732_s30, %s732_s30 }
  0x15   : > { %p723_p12 = pneg %p993_p11 }
  0x16   : > { %p742_p2 = por %p741_p7, %p740_p5 }
  0x17   : > { %p735_p0 = pnand %p733_p13, %p723_p12 }
  0x19   : > { %p736_p3 = pneg %p735_p0 }
  0x1b   : > { %p743_p6 = pnand %p742_p2, %p736_p3 }
  0x1d   : > { %746 = shalt.err (!%p743_p6)
}
  0x1e   : > { %s894_s5 = smov 128   ;;  %s895_s6 = smov 8  }
  0x1f   : > { %s1136_s2 = sld [smem:[#allocation15_spill]]  ;;  %p37_p2 = scmp.ge.s32.totalorder %s35_s29, 2 }
  0x20   : > { %s42_s9 = sadd.s32 1, %s879_s17  ;;  %p49_p6 = scmp.ne.s32.totalorder %s879_s17, %s875_s16 }
  0x21   : > { %p50_p9 = scmp.eq.s32.totalorder %s891_s20, 0  ;;  %s1151_s29 = smov (%p37_p2, %s35_s29), 0 }
  0x22   : > { %1137 = sst [smem:[#allocation14_spill]] %s1151_s29  ;;  %p1139_p13 = scmp.eq.s32.totalorder %s965_s21, 1 }
  0x23   : > { %p1011_p12 = por %p50_p9, %p49_p6  ;;  %s39_s12 = ssub.s32 %s887_s19, %s1151_s29 }
  0x24   : > { %p1017_p0 = por %p1139_p13, %p49_p6  ;;  %p40_p3 = scmp.eq.s32.totalorder %s39_s12, 0 }
  0x25   : > { %635 = dma.hbm_to_vmem [thread:$0]  (!%p993_p11), %s1136_s2, 512, %s175_s27, [#allocation7], %s894_s5, %s894_s5, %s895_s6  }
  0x26   : > { %p648_p11 = scmp.lt.s32.totalorder %s891_s20, 2  ;;  %s191_s13 = sand.u32 1, %s879_s17  }
  0x27   : > { %s591_s14 = sshll.u32 %s191_s13, 3  ;;  %s592_s26 = sshll.u32 %s887_s19, 7 }
  0x28   : > { %s1026_s22 = scalar_select %p40_p3, %s879_s17, %s42_s9  }
  0x29   : > { %s200_s30 = scalar_lea.hbm %s1125_s0, %s592_s26  ;;  %s195_s5 = scalar_lea.vmem [#allocation3], %s591_s14 }
  0x2a   : > { %s202_s6 = sshll.u32 %s195_s5, 4  ;;  %p1034_p5 = pnand %p648_p11, %p1011_p12  ;;  %s203_s6 = int_to_ptr.vmem [resolvable:$true] %s202_s6 }
  0x2b   : > { %s1041_s9 = scalar_lea.hbm %s1126_s1, %s592_s26  ;;  %s209_s12 = sand.u32 1, %s891_s20  }
  0x2c   : > { %s192_s29 = scalar_lea.sflag [#allocation4], %s191_s13  ;;  %p749_p7 = pneg %p1034_p5 }
  0x2d   : > { %s760_s27 = scalar_lea.vmem %s203_s6, 128  ;;  %s896_s10 = smov [#allocation3]  }
  0x2e   : > { %p761_p2 = scmp.ne.s32.totalorder %s203_s6, %s760_s27  ;;  %s765_s28 = sshll.u32 %s896_s10, 4  ;;  %s766_s28 = int_to_ptr.vmem [resolvable:$false] %s765_s28 }
  0x2f   : > { %s767_s5 = scalar_lea.vmem %s766_s28, 256  ;;  %p768_p12 = scmp.lt.s32.totalorder %s203_s6, %s766_s28 }
  0x30   : > { %p763_p6 = pnand %p761_p2, %p749_p7  ;;  %p769_p13 = scmp.lt.s32.totalorder %s767_s5, %s760_s27 }
  0x32   : > { %p764_p9 = pneg %p763_p6  ;;  %p770_p11 = por %p769_p13, %p768_p12 }
  0x34   : > { %p771_p3 = pnand %p770_p11, %p764_p9 }
  0x36   : > { %774 = shalt.err (!%p771_p3)
}
  0x37   : > { %639 = dma.hbm_to_vmem [thread:$0]  (!%p1034_p5), %s200_s30, 128, %s203_s6, %s192_s29  }
  0x38   : > { %s213_s2 = scalar_lea.vmem [#allocation6], %s591_s14  ;;  %s210_s26 = scalar_lea.sflag [#allocation7], %s209_s12 }
  0x39   : > { %s221_s13 = sshll.u32 %s213_s2, 4  ;;  %s897_s10 = smov [#allocation6]   ;;  %s222_s13 = int_to_ptr.vmem [resolvable:$true] %s221_s13 }
  0x3a   : > { %s788_s8 = scalar_lea.vmem %s222_s13, 128  ;;  %s793_s28 = sshll.u32 %s897_s10, 4  ;;  %s794_s28 = int_to_ptr.vmem [resolvable:$false] %s793_s28 }
  0x3b   : > { %p789_p2 = scmp.ne.s32.totalorder %s222_s13, %s788_s8  ;;  %s795_s27 = scalar_lea.vmem %s794_s28, 256 }
  0x3c   : > { %p796_p9 = scmp.lt.s32.totalorder %s222_s13, %s794_s28  ;;  %p797_p12 = scmp.lt.s32.totalorder %s795_s27, %s788_s8 }
  0x3d   : > { %p791_p6 = pnand %p789_p2, %p749_p7 }
  0x3e   : > { %p798_p13 = por %p797_p12, %p796_p9 }
  0x3f   : > { %p792_p10 = pneg %p791_p6 }
  0x41   : > { %p799_p11 = pnand %p798_p13, %p792_p10 }
  0x43   : > { %802 = shalt.err (!%p799_p11)
}
  0x44   : > { %642 = dma.hbm_to_vmem [thread:$0]  (!%p1034_p5), %s1041_s9, 128, %s222_s13, %s210_s26  }
  0x45   : > { %230 = sbr.rel (%p984_p8) target bundleno = 316 (0x13c), region = 36  ;;  %s1060_s29 = sand.u32 (!%p984_p8), 1, %s875_s16  }
  0x46   : > { %s1063_s14 = sshll.u32 (!%p984_p8), %s1060_s29, 3  ;;  %s233_s30 = scalar_lea.sflag (!%p984_p8), [#allocation4], %s1060_s29 }
  0x47   : > { %s236_s6 = scalar_lea.vmem (!%p984_p8), [#allocation3], %s1063_s14 }
  0x4a   : > { %854 = dma.done.wait (%p974_p4), %s233_s30, 128  }
  0x4b   : > { %856 = vsyncadd (%p974_p4), %s233_s30, 4294967168  ;;  %s241_s25 = sand.u32 1, %s965_s21   ;;  %s245_s9 = scalar_lea.vmem [#allocation6], %s1063_s14 }
  0x4c   : > { %s242_s7 = scalar_lea.sflag [#allocation7], %s241_s25 }
  0x4d   : > { %858 = dma.done.wait (%p974_p4), %s242_s7, 128  }
  0x4e   : > { %860 = vsyncadd (%p974_p4), %s242_s7, 4294967168 }
  0x4f   : > { %862 = dma.done.wait (%p56_p1), [#allocation7], 512  }
  0x50   : > { %864 = vsyncadd (%p56_p1), [#allocation7], 4294966784  ;;  %v898_v0 = vmov 0.0   ;;  %vm899_vm0 = vmmov 0   ;;  %v900_v1 = vmov 2   ;;  %v901_v2 = vmov 0  }
  0x51   : > { %611 = vmatprep.subr.mxu0 %v898_v0  ;;  %619 = vmatprep.mubr.msk.f32.mxu0 %vm899_vm0, %v898_v0  ;;  %v289_v3 = vld [vmem:[#allocation8 + $0x18] sm:$0xff]  ;;  %v288_v4 = vld [vmem:[#allocation8 + $0x10] sm:$0xff]  ;;  %v369_v5 = vld [vmem:[%s236_s6] sm:$0xff]  ;;  %vm290_vm1 = vcmask 261120   ;;  %v902_v9 = vmov 3   ;;  %v903_v10 = vmov 1   ;;  %v376_v16 = vlaneseq }
  0x52   : > { %714 = vset.pattern.permute.xlu1 %v900_v1  ;;  %712 = vset.pattern.permute.xlu0 %v901_v2  ;;  %v287_v6 = vld [vmem:[#allocation8 + $0x8] sm:$0xff]  ;;  %v286_v7 = vld [vmem:[#allocation8] sm:$0xff]  ;;  %v285_v8 = vld [vmem:[%s245_s9] sm:$0xff]  ;;  %v904_v11 = vmov 4   ;;  %v905_v12 = vmov 5   ;;  %v906_v13 = vmov 6  }
  0x53   : > { %612 = vmatpush3.msra.mxu0 %v289_v3  ;;  %393 = vperm.xlu1 %714, %v369_v5   ;;  %v907_v14 = vmov 7   ;;  %v377_v17 = vshrl.u32 %v376_v16, 7  ;;  %v601_v57 = vld [vmem:[%s1128_s3] ss:$0 sm:$0xff]  ;;  %s603_s12 = sshll.u32 %s883_s18, 7  ;;  %s278_s5 = scalar_lea.vmem [#allocation9], %s1063_s14 }
  0x54   : > { %613 = vmatprep.subr.mxu0 %v898_v0  ;;  %373 = vperm.xlu0 %712, %v369_v5   ;;  %s475_s2 = sshll.u32 %s278_s5, 4  ;;  %s473_s8 = scalar_lea.hbm %s1129_s4, %s603_s12  ;;  %s476_s2 = int_to_ptr.vmem [resolvable:$true] %s475_s2 }
  0x55   : > { %614 = vmatpush3.msra.mxu0 %v288_v4  ;;  %v378_v20 = vsub.s32 0, %v377_v17  ;;  %v388_v21 = vsub.s32 1, %v377_v17  ;;  %v398_v22 = vsub.s32 2, %v377_v17  ;;  %v408_v23 = vsub.s32 3, %v377_v17  ;;  %s462_s10 = scalar_lea.sflag [#allocation5], %s1060_s29  ;;  %s803_s28 = scalar_lea.vmem %s476_s2, 128 }
  0x56   : > { %615 = vmatprep.subr.mxu0 %v898_v0  ;;  %v418_v26 = vsub.s32 4, %v377_v17  ;;  %v428_v32 = vsub.s32 5, %v377_v17  ;;  %v438_v36 = vsub.s32 6, %v377_v17  ;;  %v448_v41 = vsub.s32 7, %v377_v17  ;;  %p804_p1 = scmp.ne.s32.totalorder %s476_s2, %s803_s28  ;;  %s908_s27 = smov [#allocation9]  }
  0x57   : > { %616 = vmatpush3.msra.mxu0 %v287_v6  ;;  %715 = vset.pattern.permute.xlu1 %v902_v9  ;;  %s807_s30 = sshll.u32 %s908_s27, 4  ;;  %s808_s30 = int_to_ptr.vmem [resolvable:$false] %s807_s30 }
  0x58   : > { %617 = vmatprep.subr.mxu0 %v898_v0  ;;  %403 = vperm.xlu1 %715, %v369_v5   ;;  %p805_p4 = pnand %p804_p1, %p1017_p0  ;;  %s809_s18 = scalar_lea.vmem %s808_s30, 256 }
  0x59   : > { %618 = vmatpush3.msra.mxu0 %v286_v7  ;;  %713 = vset.pattern.permute.xlu0 %v903_v10  ;;  %p810_p10 = scmp.lt.s32.totalorder %s476_s2, %s808_s30  ;;  %p811_p5 = scmp.lt.s32.totalorder %s809_s18, %s803_s28 }
  0x5a   : > { %620 = vmatmul.mubr.msk.f32.vlgmr.msra.gmra.mxu0 %vm290_vm1, %v285_v8  ;;  %383 = vperm.xlu0 %713, %v369_v5   ;;  %p806_p8 = pneg %p805_p4 }
  0x5b   : > { %p812_p7 = por %p811_p5, %p810_p10 }
  0x5c   : > { %716 = vset.pattern.permute.xlu1 %v904_v11 }
  0x5d   : > { %413 = vperm.xlu1 %716, %v369_v5   ;;  %p813_p3 = pnand %p812_p7, %p806_p8 }
  0x5e   : > { %717 = vset.pattern.permute.xlu0 %v905_v12 }
  0x5f   : > { %423 = vperm.xlu0 %717, %v369_v5  }
  0x61   : > { %718 = vset.pattern.permute.xlu1 %v906_v13 }
  0x62   : > { %433 = vperm.xlu1 %718, %v369_v5  }
  0x63   : > { %720 = vset.pattern.permute.xlu0 %v907_v14 }
  0x66   : > { %719 = vset.pattern.permute.xlu1 %v907_v14 }
  0x67   : > { %443 = vperm.xlu1 %719, %v369_v5  }
  0xce   : > { %v394_v15 = vpop.permute.xlu1 %393 }
  0xcf   : > { %v374_v19 = vpop.permute.xlu0 %373 }
  0xd3   : > { %v404_v18 = vpop.permute.xlu1 %403 }
  0xd5   : > { %v384_v30 = vpop.permute.xlu0 %383 }
  0xd8   : > { %v414_v24 = vpop.permute.xlu1 %413 }
  0xda   : > { %v424_v45 = vpop.permute.xlu0 %423 }
  0xdd   : > { %v434_v40 = vpop.permute.xlu1 %433 }
  0xe2   : > { %v444_v52 = vpop.permute.xlu1 %443 }
 0x11a   : > { %v360_v25 = vpop.f32.mrf.mxu0 }
 0x11b   : > { %v379_v27 = vrot.slane %v360_v25, %v378_v20  ;;  %v389_v28 = vrot.slane %v360_v25, %v388_v21  ;;  %v399_v29 = vrot.slane %v360_v25, %v398_v22  ;;  %v409_v35 = vrot.slane %v360_v25, %v408_v23 }
 0x11c   : > { %v621_v31 = vpop.f32.mrf.mxu0  ;;  %v419_v39 = vrot.slane %v360_v25, %v418_v26  ;;  %v429_v44 = vrot.slane %v360_v25, %v428_v32  ;;  %v439_v48 = vrot.slane %v360_v25, %v438_v36  ;;  %v449_v49 = vrot.slane %v360_v25, %v448_v41 }
 0x11d   : > { %v380_v33 = vmul.f32 %v379_v27, %v374_v19  ;;  %v390_v34 = vmul.f32 %v389_v28, %v384_v30  ;;  %v400_v38 = vmul.f32 %v399_v29, %v394_v15  ;;  %v410_v43 = vmul.f32 %v409_v35, %v404_v18 }
 0x11e   : > { %v420_v47 = vmul.f32 %v419_v39, %v414_v24  ;;  %v430_v51 = vmul.f32 %v429_v44, %v424_v45  ;;  %v440_v54 = vmul.f32 %v439_v48, %v434_v40  ;;  %v450_v55 = vmul.f32 %v449_v49, %v444_v52 }
 0x11f   : > { %v391_v37 = vadd.f32 %v390_v34, %v380_v33 }
 0x121   : > { %v401_v42 = vadd.f32 %v400_v38, %v391_v37 }
 0x123   : > { %v411_v46 = vadd.f32 %v410_v43, %v401_v42 }
 0x125   : > { %v421_v50 = vadd.f32 %v420_v47, %v411_v46 }
 0x127   : > { %v431_v53 = vadd.f32 %v430_v51, %v421_v50 }
 0x129   : > { %v441_v56 = vadd.f32 %v440_v54, %v431_v53 }
 0x12b   : > { %v451_v58 = vadd.f32 %v450_v55, %v441_v56 }
 0x12d   : > { %v459_v59 = vadd.f32 %v601_v57, %v451_v58 }
 0x12f   : > { %460 = vst [vmem:[%s278_s5] sm:$0xff] %v459_v59 }
 0x130   : > { %816 = shalt.err (!%p813_p3)
}
 0x131   : > { %s817_s14 = scalar_lea.hbm %s473_s8, 128  ;;  %s821_s25 = scalar_lea.hbm %s1129_s4, 256 }
 0x132   : > { %p818_p2 = scmp.ne.s32.totalorder %s473_s8, %s817_s14  ;;  %p822_p12 = scmp.lt.s32.totalorder %s473_s8, %s1129_s4 }
 0x133   : > { %p823_p13 = scmp.lt.s32.totalorder %s821_s25, %s817_s14 }
 0x134   : > { %p819_p6 = pnand %p818_p2, %p1017_p0 }
 0x135   : > { %p824_p11 = por %p823_p13, %p822_p12 }
 0x136   : > { %p820_p9 = pneg %p819_p6 }
 0x138   : > { %p825_p1 = pnand %p824_p11, %p820_p9 }
 0x13a   : > { %828 = shalt.err (!%p825_p1)
}
 0x13b   : > { %630 = dma.vmem_to_hbm [thread:$0]  (%p1017_p0), %s476_s2, 128, %s473_s8, %s462_s10  }
 0x13c PF: > { %s487_s21 = sand.u32 1, %s871_s15   ;;  %p1142_p4 = scmp.ne.s32.totalorder %s1133_s24, 0 }
 0x13d   : > { %p1143_p8 = scmp.ge.s32.totalorder %s891_s20, 2  ;;  %s488_s23 = scalar_lea.sflag [#allocation5], %s487_s21 }
 0x13f   : > { %p644_p10 = pnand %p1143_p8, %p1142_p4 }
 0x141   : > { %p645_p5 = pneg %p644_p10 }
 0x143   : > { %866 = dma.done.wait (%p645_p5), %s488_s23, 128  }
 0x144   : > { %868 = vsyncadd (%p645_p5), %s488_s23, 4294967168  ;;  %s23_s20 = sadd.s32 1, %s891_s20   ;;  %s1144_s11 = sld [smem:[#allocation14_spill]] }
 0x145   : > { %p20_p7 = scmp.ge.s32.totalorder %s23_s20, 4   ;;  %s1145_s15 = smov %s875_s16 }
 0x146   : > { %s1146_s16 = smov %s879_s17  ;;  %s1147_s17 = smov %s1026_s22 }
 0x147   : > { %s1148_s18 = smov %s887_s19  ;;  %22 = sbr.rel (!%p20_p7) target bundleno = 10 (0xa), region = 106 }
 0x14a   : > { %s1149_s19 = smov %s1144_s11 }
 0x14c   :  { %493 = vsyncpa [#allocation4], 1 }
 0x14d   :  { %495 = vsyncpa [#allocation4 + $0x1], 1 }
 0x14e   :  { %496 = vsyncpa [#allocation7], 1 }
 0x14f   :  { %498 = vsyncpa [#allocation7 + $0x1], 1 }
 0x150   :  { %499 = vsyncpa [#allocation5], 1 }
 0x151   :  { %501 = vsyncpa [#allocation5 + $0x1], 1 }

</bundles_post_ra>
